<compile_context>
chip_gen: v5e
topology: v5e:2x2
jax: 0.10.0
libtpu: 0.0.40
codegen_flags: <defaults>
</compile_context>

<pallas_src>
import functools

import jax
import jax.numpy as jnp
from jax.experimental import pallas as pl
from jax.experimental.pallas import tpu as pltpu


NEG_SLOPE = 0.01  # torch.nn.LeakyReLU default

# Contract the last axis of both operands:  (M, K) x (N, K) -> (M, N)
_NT_DIMS = (((1,), (1,)), ((), ()))


def _leaky_relu(x):
    return jnp.where(x > 0, x, NEG_SLOPE * x)


def _round_up(x, m):
    return -(-x // m) * m


def actor_kernel(x_ref, w1_ref, w2_ref, w3_ref, cols_ref, o_ref, *, h1, h2, a):
    # cols_ref packs [b1 | b2 | b3 | (max-min) | min] as (Fmax, 5) f32 columns,
    # zero-padded at the bottom.  Column vectors broadcast along lanes (batch).
    b1 = cols_ref[0:h1, 0:1]
    b2 = cols_ref[0:h2, 1:2]
    b3 = cols_ref[0:a, 2:3]
    scale = cols_ref[0:a, 3:4]
    minact = cols_ref[0:a, 4:5]

    # State tile arrives in its natural (TB, S) f32 layout; cast in-kernel.
    x = x_ref[...].astype(w1_ref.dtype)

    # Layer 1: (H1, S) x (TB, S)^T -> (H1, TB)  (batch in lanes from here on).
    y1 = jax.lax.dot_general(w1_ref[...], x, _NT_DIMS,
                             preferred_element_type=jnp.float32) + b1
    y1 = _leaky_relu(y1)

    # Layer 2: (H2, H1) @ (H1, TB) -> (H2, TB)
    y2 = jnp.dot(w2_ref[...], y1.astype(w2_ref.dtype),
                 preferred_element_type=jnp.float32) + b2
    y2 = _leaky_relu(y2)

    # Layer 3: (A, H2) @ (H2, TB) -> (A, TB)
    y3 = jnp.dot(w3_ref[...], y2.astype(w3_ref.dtype),
                 preferred_element_type=jnp.float32) + b3

    # Exact sigmoid with a single EUP transcendental.
    sig = 0.5 * (jnp.tanh(0.5 * y3) + 1.0)

    o_ref[...] = (sig * scale + minact).astype(o_ref.dtype)


def pack_actor_params(params, min_action, max_action, matmul_dtype=jnp.bfloat16):
    """Pre-pack (once, outside the hot path):
      * weights transposed to (out_features, in_features) in the matmul dtype,
      * all per-feature row vectors as columns of one (Fmax, 5) f32 array:
        [b1 | b2 | b3 | (max-min) | min]."""
    w1, b1, w2, b2, w3, b3 = params  # weights stored (in_features, out_features)
    h1, h2, a = w1.shape[1], w2.shape[1], w3.shape[1]
    fmax = max(h1, h2, a)

    def col(v):
        v = jnp.asarray(v, jnp.float32).reshape(-1)
        return jnp.pad(v, (0, fmax - v.shape[0]))

    cols = jnp.stack(
        [col(b1), col(b2), col(b3),
         col(jnp.asarray(max_action) - jnp.asarray(min_action)),
         col(min_action)],
        axis=1)  # (fmax, 5) f32

    return (w1.T.astype(matmul_dtype),
            w2.T.astype(matmul_dtype),
            w3.T.astype(matmul_dtype),
            cols)


def actor_forward(state, packed, *, block_b=2048):
    """state: (B, S) float32.  packed: output of pack_actor_params.
    Returns (B, A) float32."""
    w1t, w2t, w3t, cols = packed
    B, S = state.shape
    H1, H2, A = w1t.shape[0], w2t.shape[0], w3t.shape[0]
    fmax = cols.shape[0]

    # Batch tiling: one full-size block for small B (block == array dims is
    # legal); otherwise lane-aligned (multiple-of-128) tiles with >= 2 grid
    # steps so ("parallel",) shards the batch across both TensorCores on v7x.
    if B <= 256:
        tb, bp = B, B
    else:
        tb = min(block_b, _round_up(-(-B // 2), 128))
        tb = _round_up(tb, 128)
        bp = _round_up(B, tb)
    if bp != B:
        state = jnp.pad(state, ((0, bp - B), (0, 0)))
    grid = (bp // tb,)

    kernel = functools.partial(actor_kernel, h1=H1, h2=H2, a=A)

    out_t = pl.pallas_call(
        kernel,
        out_shape=jax.ShapeDtypeStruct((A, bp), jnp.float32),
        grid=grid,
        in_specs=[
            pl.BlockSpec((tb, S), lambda i: (i, 0)),     # f32 state tiles (pipelined)
            pl.BlockSpec((H1, S), lambda i: (0, 0)),     # weights: constant index
            pl.BlockSpec((H2, H1), lambda i: (0, 0)),    #   -> VMEM-resident
            pl.BlockSpec((A, H2), lambda i: (0, 0)),
            pl.BlockSpec((fmax, 5), lambda i: (0, 0)),   # packed biases / bounds
        ],
        out_specs=pl.BlockSpec((A, tb), lambda i: (0, i)),  # lane-dense output slab
        compiler_params=pltpu.CompilerParams(
            dimension_semantics=("parallel",)),
    )(state, w1t, w2t, w3t, cols)

    # (A, bp) -> (B, A): one tiny wrapper-side transpose of the final actions.
    return out_t[:, :B].T


def init_params(key, state_dim, action_dim, layers=(256, 256)):
    """Deterministic parameter init (uniform, like torch's default Linear init).
    Weights are stored (in_features, out_features), i.e. forward is x @ W."""
    dims = [state_dim] + list(layers) + [action_dim]
    params = []
    for i in range(len(dims) - 1):
        key, kw, kb = jax.random.split(key, 3)
        bound = 1.0 / jnp.sqrt(jnp.float32(dims[i]))
        w = jax.random.uniform(kw, (dims[i], dims[i + 1]), jnp.float32, -bound, bound)
        b = jax.random.uniform(kb, (dims[i + 1],), jnp.float32, -bound, bound)
        params.extend([w, b])
    return tuple(params)


def actor_reference(state, params, min_action, max_action):
    """Pure-JAX f32 reference of the same forward pass."""
    w1, b1, w2, b2, w3, b3 = params
    h = jnp.dot(state, w1) + b1
    h = jnp.where(h > 0, h, NEG_SLOPE * h)
    h = jnp.dot(h, w2) + b2
    h = jnp.where(h > 0, h, NEG_SLOPE * h)
    a = jax.nn.sigmoid(jnp.dot(h, w3) + b3)
    return a * (max_action - min_action) + min_action


if __name__ == "__main__":
    key = jax.random.PRNGKey(0)

    state_dim = 16
    action_dim = 8
    hidden = (32, 32)  # small test shapes (module default is (256, 256))

    key, k_params, k_s1, k_s2 = jax.random.split(key, 4)
    params = init_params(k_params, state_dim, action_dim, hidden)

    # Deterministic per-dimension action bounds.
    min_action = -jnp.linspace(0.5, 2.0, action_dim, dtype=jnp.float32)
    max_action = jnp.linspace(1.0, 3.0, action_dim, dtype=jnp.float32)

    packed = pack_actor_params(params, min_action, max_action,
                               matmul_dtype=jnp.bfloat16)
    fwd = jax.jit(actor_forward, static_argnames=("block_b",))

    # --- small batch: single full-size block (grid = 1) ---
    batch = 4
    state = jax.random.normal(k_s1, (batch, state_dim), jnp.float32)
    out = jax.block_until_ready(fwd(state, packed))
    ref = actor_reference(state, params, min_action, max_action)
    assert out.shape == (batch, action_dim)
    # bf16 matmul inputs (f32 accumulation, exact sigmoid) -> relaxed tolerance
    assert jnp.allclose(out, ref, atol=1e-2, rtol=1e-2), float(jnp.abs(out - ref).max())

    # --- large batch, default tiles: 2 lane-aligned grid steps (300 -> pad 512) ---
    batch2 = 300
    state2 = jax.random.normal(k_s2, (batch2, state_dim), jnp.float32)
    out2 = jax.block_until_ready(fwd(state2, packed))
    ref2 = actor_reference(state2, params, min_action, max_action)
    assert out2.shape == (batch2, action_dim)
    assert jnp.allclose(out2, ref2, atol=1e-2, rtol=1e-2), float(jnp.abs(out2 - ref2).max())

    # --- same batch, smaller tile: 3 grid steps with padding (300 -> 384) ---
    out3 = jax.block_until_ready(fwd(state2, packed, block_b=128))
    assert out3.shape == (batch2, action_dim)
    assert jnp.allclose(out3, ref2, atol=1e-2, rtol=1e-2), float(jnp.abs(out3 - ref2).max())

    print("KERNEL_OK")
</pallas_src>

<mosaic_0001>
module attributes {stable_mosaic.version = 11 : i64} {
  func.func @actor_kernel(%arg0: i32, %arg1: memref<4x16xf32, #tpu.memory_space<vmem>>, %arg2: memref<32x16xbf16, #tpu.memory_space<vmem>>, %arg3: memref<32x32xbf16, #tpu.memory_space<vmem>>, %arg4: memref<8x32xbf16, #tpu.memory_space<vmem>>, %arg5: memref<32x5xf32, #tpu.memory_space<vmem>>, %arg6: memref<8x4xf32, #tpu.memory_space<vmem>>) attributes {dimension_semantics = [#tpu.dimension_semantics<parallel>], iteration_bounds = array<i64: 1>, scalar_prefetch = 0 : i64, scratch_operands = 0 : i64, tpu.core_type = #tpu.core_type<tc>, window_params = [{transform_indices = @transform_0, window_bounds = array<i64: 4, 16>}, {pipeline_mode = #tpu.pipeline_mode<synchronous>, transform_indices = @transform_1, window_bounds = array<i64: 32, 16>}, {pipeline_mode = #tpu.pipeline_mode<synchronous>, transform_indices = @transform_2, window_bounds = array<i64: 32, 32>}, {pipeline_mode = #tpu.pipeline_mode<synchronous>, transform_indices = @transform_3, window_bounds = array<i64: 8, 32>}, {pipeline_mode = #tpu.pipeline_mode<synchronous>, transform_indices = @transform_4, window_bounds = array<i64: 32, 5>}, {transform_indices = @transform_5, window_bounds = array<i64: 8, 4>}]} {
    %c0 = arith.constant 0 : index
    %c0_0 = arith.constant 0 : index
    %0 = vector.load %arg5[%c0, %c0_0] : memref<32x5xf32, #tpu.memory_space<vmem>>, vector<32x1xf32>
    %c0_1 = arith.constant 0 : index
    %c1 = arith.constant 1 : index
    %1 = vector.load %arg5[%c0_1, %c1] : memref<32x5xf32, #tpu.memory_space<vmem>>, vector<32x1xf32>
    %c0_2 = arith.constant 0 : index
    %c2 = arith.constant 2 : index
    %2 = vector.load %arg5[%c0_2, %c2] : memref<32x5xf32, #tpu.memory_space<vmem>>, vector<8x1xf32>
    %c0_3 = arith.constant 0 : index
    %c3 = arith.constant 3 : index
    %3 = vector.load %arg5[%c0_3, %c3] : memref<32x5xf32, #tpu.memory_space<vmem>>, vector<8x1xf32>
    %c0_4 = arith.constant 0 : index
    %c4 = arith.constant 4 : index
    %4 = vector.load %arg5[%c0_4, %c4] : memref<32x5xf32, #tpu.memory_space<vmem>>, vector<8x1xf32>
    %c0_5 = arith.constant 0 : index
    %c0_6 = arith.constant 0 : index
    %5 = vector.load %arg1[%c0_5, %c0_6] : memref<4x16xf32, #tpu.memory_space<vmem>>, vector<4x16xf32>
    %6 = arith.truncf %5 : vector<4x16xf32> to vector<4x16xbf16>
    %c0_7 = arith.constant 0 : index
    %c0_8 = arith.constant 0 : index
    %7 = vector.load %arg2[%c0_7, %c0_8] : memref<32x16xbf16, #tpu.memory_space<vmem>>, vector<32x16xbf16>
    %cst = arith.constant dense<0.000000e+00> : vector<32x4xf32>
    %8 = tpu.matmul %7, %6, %cst {dimension_numbers = #tpu.dot_dimension_numbers<[1], [1], [0], [0], [0, 0, 1, 0], [], []>} : vector<32x16xbf16>, vector<4x16xbf16>, vector<32x4xf32> -> vector<32x4xf32>
    %9 = vector.broadcast %0 : vector<32x1xf32> to vector<32x4xf32>
    %10 = arith.addf %8, %9 : vector<32x4xf32>
    %cst_9 = arith.constant 0.000000e+00 : f32
    %11 = vector.broadcast %cst_9 : f32 to vector<32x4xf32>
    %12 = arith.cmpf ogt, %10, %11 : vector<32x4xf32>
    %cst_10 = arith.constant 0.00999999977 : f32
    %13 = vector.broadcast %cst_10 : f32 to vector<32x4xf32>
    %14 = arith.mulf %13, %10 : vector<32x4xf32>
    %15 = arith.select %12, %10, %14 : vector<32x4xi1>, vector<32x4xf32>
    %c0_11 = arith.constant 0 : index
    %c0_12 = arith.constant 0 : index
    %16 = vector.load %arg3[%c0_11, %c0_12] : memref<32x32xbf16, #tpu.memory_space<vmem>>, vector<32x32xbf16>
    %17 = arith.truncf %15 : vector<32x4xf32> to vector<32x4xbf16>
    %cst_13 = arith.constant dense<0.000000e+00> : vector<32x4xf32>
    %18 = tpu.matmul %16, %17, %cst_13 {dimension_numbers = #tpu.dot_dimension_numbers<[1], [0], [0], [1], [0, 0, 1, 1], [], []>} : vector<32x32xbf16>, vector<32x4xbf16>, vector<32x4xf32> -> vector<32x4xf32>
    %19 = vector.broadcast %1 : vector<32x1xf32> to vector<32x4xf32>
    %20 = arith.addf %18, %19 : vector<32x4xf32>
    %cst_14 = arith.constant 0.000000e+00 : f32
    %21 = vector.broadcast %cst_14 : f32 to vector<32x4xf32>
    %22 = arith.cmpf ogt, %20, %21 : vector<32x4xf32>
    %cst_15 = arith.constant 0.00999999977 : f32
    %23 = vector.broadcast %cst_15 : f32 to vector<32x4xf32>
    %24 = arith.mulf %23, %20 : vector<32x4xf32>
    %25 = arith.select %22, %20, %24 : vector<32x4xi1>, vector<32x4xf32>
    %c0_16 = arith.constant 0 : index
    %c0_17 = arith.constant 0 : index
    %26 = vector.load %arg4[%c0_16, %c0_17] : memref<8x32xbf16, #tpu.memory_space<vmem>>, vector<8x32xbf16>
    %27 = arith.truncf %25 : vector<32x4xf32> to vector<32x4xbf16>
    %cst_18 = arith.constant dense<0.000000e+00> : vector<8x4xf32>
    %28 = tpu.matmul %26, %27, %cst_18 {dimension_numbers = #tpu.dot_dimension_numbers<[1], [0], [0], [1], [0, 0, 1, 1], [], []>} : vector<8x32xbf16>, vector<32x4xbf16>, vector<8x4xf32> -> vector<8x4xf32>
    %29 = vector.broadcast %2 : vector<8x1xf32> to vector<8x4xf32>
    %30 = arith.addf %28, %29 : vector<8x4xf32>
    %cst_19 = arith.constant 5.000000e-01 : f32
    %31 = vector.broadcast %cst_19 : f32 to vector<8x4xf32>
    %32 = arith.mulf %31, %30 : vector<8x4xf32>
    %33 = math.tanh %32 : vector<8x4xf32>
    %cst_20 = arith.constant 1.000000e+00 : f32
    %34 = vector.broadcast %cst_20 : f32 to vector<8x4xf32>
    %35 = arith.addf %33, %34 : vector<8x4xf32>
    %cst_21 = arith.constant 5.000000e-01 : f32
    %36 = vector.broadcast %cst_21 : f32 to vector<8x4xf32>
    %37 = arith.mulf %36, %35 : vector<8x4xf32>
    %38 = vector.broadcast %3 : vector<8x1xf32> to vector<8x4xf32>
    %39 = arith.mulf %37, %38 : vector<8x4xf32>
    %40 = vector.broadcast %4 : vector<8x1xf32> to vector<8x4xf32>
    %41 = arith.addf %39, %40 : vector<8x4xf32>
    %c0_22 = arith.constant 0 : index
    %c0_23 = arith.constant 0 : index
    %42 = vector.load %arg6[%c0_22, %c0_23] : memref<8x4xf32, #tpu.memory_space<vmem>>, vector<8x4xf32>
    tpu.vector_store %arg6[%c0_22, %c0_23], %41 {strides = array<i32>} : memref<8x4xf32, #tpu.memory_space<vmem>>, vector<8x4xf32>,
    return
  }
  func.func @transform_0(%arg0: i32) -> (i32, i32) {
    %c0_i32 = arith.constant 0 : i32
    %c0_i32_0 = arith.constant 0 : i32
    return %arg0, %c0_i32 : i32, i32
  }
  func.func @transform_1(%arg0: i32) -> (i32, i32) {
    %c0_i32 = arith.constant 0 : i32
    %c0_i32_0 = arith.constant 0 : i32
    %c0_i32_1 = arith.constant 0 : i32
    return %c0_i32, %c0_i32_0 : i32, i32
  }
  func.func @transform_2(%arg0: i32) -> (i32, i32) {
    %c0_i32 = arith.constant 0 : i32
    %c0_i32_0 = arith.constant 0 : i32
    %c0_i32_1 = arith.constant 0 : i32
    return %c0_i32, %c0_i32_0 : i32, i32
  }
  func.func @transform_3(%arg0: i32) -> (i32, i32) {
    %c0_i32 = arith.constant 0 : i32
    %c0_i32_0 = arith.constant 0 : i32
    %c0_i32_1 = arith.constant 0 : i32
    return %c0_i32, %c0_i32_0 : i32, i32
  }
  func.func @transform_4(%arg0: i32) -> (i32, i32) {
    %c0_i32 = arith.constant 0 : i32
    %c0_i32_0 = arith.constant 0 : i32
    %c0_i32_1 = arith.constant 0 : i32
    return %c0_i32, %c0_i32_0 : i32, i32
  }
  func.func @transform_5(%arg0: i32) -> (i32, i32) {
    %c0_i32 = arith.constant 0 : i32
    %c0_i32_0 = arith.constant 0 : i32
    return %c0_i32, %arg0 : i32, i32
  }
}

</mosaic_0001>

<bundles_post_ra>
// kernel: actor_forward.1
= control target key start
LH: loop header
LB: loop body
LE: loop exit
PB: predicated region body
PF: predicated region fallthrough
CT: control target
= control target key end

     0   :  { %vm61_vm0 = vcmask 130048   ;;  %v257_v1 = vmov 0   ;;  %v258_v10 = vmov 1   ;;  %vm134_vm5 = vcmask 261120   ;;  %s338_s0 = inlined_call_operand.vmem [shape: f32[4,16], index: 0, kind: input, shape index: {}]   ;;  %s339_s4 = inlined_call_operand.vmem [shape: f32[32,5], index: 4, kind: input, shape index: {}]   ;;  %s340_s1 = inlined_call_operand.vmem [shape: bf16[32,16], index: 1, kind: input, shape index: {}]   ;;  %s341_s2 = inlined_call_operand.vmem [shape: bf16[32,32], index: 2, kind: input, shape index: {}]   ;;  %s342_s3 = inlined_call_operand.vmem [shape: bf16[8,32], index: 3, kind: input, shape index: {}]   ;;  %s343_s5 = inlined_call_operand.vmem [shape: f32[8,4], index: 5, kind: output, shape index: {}]  }
   0x1   :  { %v25_v0 = vld [vmem:[%s338_s0] sm:$0xf]  ;;  %246 = vset.pattern.permute.xlu0 %v257_v1  ;;  %247 = vset.pattern.permute.xlu1 %v257_v1  ;;  %v23_v3 = vld [vmem:[%s339_s4 + $0x10] sm:$0xff]  ;;  %v237_v7 = vld [vmem:[%s340_s1 + $0x8] sm:$0xff]  ;;  %v259_v37 = vmov 3   ;;  %v260_v38 = vmov 2  }
   0x2   :  { %v26_v2 = vpack.c.bf16 %v25_v0, %v25_v0  ;;  %v301_v4 = vld [vmem:[%s339_s4] sm:$0xff]  ;;  %43 = vperm.xlu0 %246, %v23_v3   ;;  %v24_v8 = vld [vmem:[%s339_s4 + $0x18] sm:$0xff]  ;;  %v22_v9 = vld [vmem:[%s339_s4 + $0x8] sm:$0xff]  ;;  %248 = vset.pattern.permute.xlu2 %v258_v10  ;;  %v261_v39 = vmov 4   ;;  %vm209_vm10 = vcmask 31744  }
   0x3   :  { %33 = vperm.xlu1 %247, %v301_v4   ;;  %v236_v6 = vld [vmem:[%s340_s1] sm:$0xff]  ;;  %117 = vperm.xlu2 %248, %v23_v3   ;;  %v239_v34 = vld [vmem:[%s341_s2 + $0x8] sm:$0xff] }
   0x4   :  { %v69_v5 = vsel %vm61_vm0, %v26_v2, 0  ;;  %v238_v33 = vld [vmem:[%s341_s2] sm:$0xff] }
   0x5   :  { %78 = vmatpush.bf16.xpose.msra.mxu0 %v69_v5  ;;  %240 = vmatpush.bf16.xpose.msra.mxu3 %v69_v5  ;;  %v172_v60 = vld [vmem:[%s342_s3] sm:$0xf] }
   0xa   :  { %48 = vperm.xlu0 %246, %v24_v8  }
   0xb   :  { %38 = vperm.xlu1 %247, %v22_v9   ;;  %121 = vperm.xlu2 %248, %v24_v8  }
   0xc   :  { %223 = vmatmul.msk.bf16.vlgmr.msra.gmra.mxu0 %vm61_vm0, %v236_v6  ;;  %224 = vmatmul.msk.bf16.vlgmr.msra.gmra.mxu3 %vm61_vm0, %v237_v7 }
  0x12   :  { %249 = vset.pattern.permute.xlu0 %v258_v10 }
  0x13   :  { %250 = vset.pattern.permute.xlu1 %v258_v10  ;;  %109 = vperm.xlu0 %249, %v301_v4  }
  0x14   :  { %113 = vperm.xlu1 %250, %v22_v9   ;;  %251 = vset.pattern.permute.xlu2 %v260_v38 }
  0x15   :  { %176 = vperm.xlu2 %251, %v301_v4  }
  0x1b   :  { %254 = vset.pattern.permute.xlu0 %v261_v39 }
  0x1c   :  { %252 = vset.pattern.permute.xlu1 %v259_v37 }
  0x1d   :  { %200 = vperm.xlu1 %252, %v301_v4   ;;  %253 = vset.pattern.permute.xlu2 %v261_v39 }
  0x1e   :  { %205 = vperm.xlu2 %253, %v301_v4  }
  0x5d   :  { %v118_v40 = vpop.permute.xlu2 %117 }
  0x65   :  { %v122_v46 = vpop.permute.xlu2 %121 }
  0x6f   :  { %v177_v61 = vpop.permute.xlu2 %176 }
  0x74   :  { %v44_v13 = vpop.permute.xlu0 %43 }
  0x75   :  { %v34_v11 = vpop.permute.xlu1 %33 }
  0x78   :  { %v206_v6 = vpop.permute.xlu2 %205 }
  0x7c   :  { %v49_v20 = vpop.permute.xlu0 %48 }
  0x7d   :  { %v39_v15 = vpop.permute.xlu1 %38 }
  0x85   :  { %v110_v44 = vpop.permute.xlu0 %109 }
  0x86   :  { %v114_v42 = vpop.permute.xlu1 %113 }
  0x89   :  { %v80_v12 = vpop.f32.mrf.mxu0 }
  0x8a   :  { %v81_v18 = vadd.f32 %v80_v12, %v34_v11 }
  0x8c   :  { %v94_v24 = vmul.f32 0.01, %v81_v18  ;;  %vm90_vm3 = vcmp.gt.f32.partialorder %v81_v18, 0.0 }
  0x8e   :  { %v98_v30 = vsel %vm90_vm3, %v81_v18, %v94_v24 }
  0x8f   :  { %v85_v14 = vpop.f32.mrf.mxu3  ;;  %v201_v4 = vpop.permute.xlu1 %200 }
  0x90   :  { %v86_v17 = vadd.f32 %v85_v14, %v44_v13 }
  0x91   :  { %v82_v16 = vpop.f32.mrf.mxu0 }
  0x92   :  { %v83_v19 = vadd.f32 %v82_v16, %v39_v15  ;;  %v96_v22 = vmul.f32 0.01, %v86_v17  ;;  %vm92_vm1 = vcmp.gt.f32.partialorder %v86_v17, 0.0 }
  0x94   :  { %v95_v25 = vmul.f32 0.01, %v83_v19  ;;  %vm91_vm4 = vcmp.gt.f32.partialorder %v83_v19, 0.0  ;;  %v100_v27 = vsel %vm92_vm1, %v86_v17, %v96_v22 }
  0x96   :  { %v99_v31 = vsel %vm91_vm4, %v83_v19, %v95_v25 }
  0x97   :  { %v87_v21 = vpop.f32.mrf.mxu3  ;;  %v106_v32 = vpack.c.bf16 %v99_v31, %v98_v30 }
  0x98   :  { %v88_v23 = vadd.f32 %v87_v21, %v49_v20 }
  0x9a   :  { %v97_v26 = vmul.f32 0.01, %v88_v23  ;;  %vm93_vm2 = vcmp.gt.f32.partialorder %v88_v23, 0.0 }
  0x9c   :  { %v101_v28 = vsel %vm93_vm2, %v88_v23, %v97_v26 }
  0x9d   :  { %v107_v29 = vpack.c.bf16 %v101_v28, %v100_v27 }
  0x9f   :  { %147 = vmatpush.bf16.msra.mxu1 %v107_v29 }
  0xa3   :  { %148 = vmatpush.bf16.msra.mxu1 %v106_v32 }
  0xa6   :  { %233 = vmatmul.msk.bf16.vlgmr.msra.gmra.mxu1 %vm134_vm5, %v238_v33 }
  0xb6   :  { %234 = vmatmul.msk.bf16.gmra.mxu1 %vm134_vm5, %v239_v34 }
 0x123   :  { %v150_v35 = vpop.f32.mrf.mxu1 }
 0x124   :  { %v151_v48 = vadd.f32 %v150_v35, %v110_v44 }
 0x126   :  { %v164_v53 = vmul.f32 0.01, %v151_v48  ;;  %vm160_vm9 = vcmp.gt.f32.partialorder %v151_v48, 0.0 }
 0x128   :  { %v168_v58 = vsel %vm160_vm9, %v151_v48, %v164_v53 }
 0x12b   :  { %v152_v36 = vpop.f32.mrf.mxu1 }
 0x12c   :  { %v153_v45 = vadd.f32 %v152_v36, %v114_v42 }
 0x12e   :  { %v165_v51 = vmul.f32 0.01, %v153_v45  ;;  %vm161_vm8 = vcmp.gt.f32.partialorder %v153_v45, 0.0 }
 0x130   :  { %v169_v57 = vsel %vm161_vm8, %v153_v45, %v165_v51 }
 0x131   :  { %v173_v59 = vpack.c.bf16 %v169_v57, %v168_v58 }
 0x133   :  { %v155_v41 = vpop.f32.mrf.mxu1 }
 0x134   :  { %v156_v43 = vadd.f32 %v155_v41, %v118_v40 }
 0x136   :  { %v166_v49 = vmul.f32 0.01, %v156_v43  ;;  %vm162_vm6 = vcmp.gt.f32.partialorder %v156_v43, 0.0 }
 0x138   :  { %v170_v54 = vsel %vm162_vm6, %v156_v43, %v166_v49 }
 0x13b   :  { %v157_v47 = vpop.f32.mrf.mxu1 }
 0x13c   :  { %v158_v50 = vadd.f32 %v157_v47, %v122_v46 }
 0x13e   :  { %v167_v52 = vmul.f32 0.01, %v158_v50  ;;  %vm163_vm7 = vcmp.gt.f32.partialorder %v158_v50, 0.0 }
 0x140   :  { %v171_v55 = vsel %vm163_vm7, %v158_v50, %v167_v52 }
 0x141   :  { %v174_v56 = vpack.c.bf16 %v171_v55, %v170_v54 }
 0x143   :  { %188 = vmatpush.bf16.msra.mxu2 %v174_v56 }
 0x147   :  { %189 = vmatpush.bf16.msra.mxu2 %v173_v59 }
 0x14a   :  { %235 = vmatmul.msk.bf16.vlgmr.msra.gmra.mxu2 %vm134_vm5, %v172_v60 }
 0x1cd   :  { %v191_v62 = vpop.f32.mrf.mxu2 }
 0x1ce   :  { %v192_v63 = vadd.f32 %v191_v62, %v177_v61 }
 0x1d0   :  { %v195_v0 = vmul.f32 0.5, %v192_v63 }
 0x1d2   :  { %255 = vtanh.f32 %v195_v0 }
 0x1d5   :  { %v193_v1 = vpop.f32.mrf.mxu2 }
 0x1d8   :  { %v256_v2 = vpop.eup %255 }
 0x1d9   :  { %v197_v3 = vadd.f32 1.0, %v256_v2 }
 0x1db   :  { %v198_v5 = vmul.f32 0.5, %v197_v3 }
 0x1dd   :  { %v203_v7 = vmul.f32 %v201_v4, %v198_v5 }
 0x1df   :  { %v208_v8 = vadd.f32 %v206_v6, %v203_v7 }
 0x1e1   :  { %210 = vst.msk [vmem:[%s343_s5] sm:$0xff] %vm209_vm10, %v208_v8 }

</bundles_post_ra>
